<compile_context>
chip_gen: v7x
topology: tpu7x:2x2x1
jax: 0.10.0
libtpu: 0.0.40
codegen_flags: <defaults>
</compile_context>

<pallas_src>
import functools
import math

import jax
import jax.numpy as jnp
from jax import lax
from jax.experimental import pallas as pl
from jax.experimental.pallas import tpu as pltpu

NEG_INF = float("-inf")


# ----------------------------------------------------------------------------
# Kernel 0: batch-invariant cosine similarities [H, L], computed once.
# ----------------------------------------------------------------------------
def _cos_kernel(low_ref, high_ref, cos_ref):
    low = low_ref[...]                                                  # [L, D]
    high = high_ref[...]                                                # [H, D]
    inv_low = lax.rsqrt(jnp.sum(low * low, axis=1, keepdims=True))     # [L, 1]
    inv_high = lax.rsqrt(jnp.sum(high * high, axis=1, keepdims=True))  # [H, 1]
    cos_ref[...] = lax.dot_general(high * inv_high, low * inv_low,
                                   (((1,), (1,)), ((), ())),
                                   preferred_element_type=jnp.float32)  # [H, L]


def compute_cosine(low_emb, high_emb):
    H = high_emb.shape[0]
    L = low_emb.shape[0]
    return pl.pallas_call(
        _cos_kernel,
        out_shape=jax.ShapeDtypeStruct((H, L), jnp.float32),
    )(low_emb, high_emb)


# ----------------------------------------------------------------------------
# Kernel 1: per-batch noise embeddings.  grid=(bs,), "parallel".
# ----------------------------------------------------------------------------
def _noise_kernel(mask_ref, cos_ref, low_ref, out_ref):
    cos = cos_ref[...]                                   # [H, L]
    H, L = cos.shape
    mask = mask_ref[0] != 0                              # [H, L] combined hi|lo mask
    m = jnp.where(mask, NEG_INF, cos)                    # single where pass

    # Keep only the first (lowest h) maximum per low-freq column (torch argmax
    # + max_mask scatter).  Fully masked columns keep row 0, which stays -inf
    # and contributes nothing.
    row_ids = lax.broadcasted_iota(jnp.int32, (H, L), 0)
    col_max = jnp.max(m, axis=0, keepdims=True)
    is_max = m == col_max
    first_idx = jnp.min(jnp.where(is_max, row_ids, H), axis=0, keepdims=True)
    m2 = jnp.where(row_ids == first_idx, m, NEG_INF)     # [H, L]

    # Softmax over l with the extra "-10000" sink column torch appends/drops.
    row_max = jnp.maximum(jnp.max(m2, axis=1, keepdims=True), -10000.0)
    e = jnp.exp(m2 - row_max)
    denom = jnp.sum(e, axis=1, keepdims=True) + jnp.exp(-10000.0 - row_max)
    probs = e / denom                                    # [H, L]

    out_ref[0] = jnp.dot(probs, low_ref[...], preferred_element_type=jnp.float32)


def compute_noise_embeddings(comb_mask, cos, low_emb):
    bs, H, L = comb_mask.shape
    D = low_emb.shape[1]
    return pl.pallas_call(
        _noise_kernel,
        out_shape=jax.ShapeDtypeStruct((bs, H, D), jnp.float32),
        grid=(bs,),
        in_specs=[
            pl.BlockSpec((1, H, L), lambda b: (b, 0, 0)),   # per-batch mask
            pl.BlockSpec((H, L), lambda b: (0, 0)),         # batch-invariant cos
            pl.BlockSpec((L, D), lambda b: (0, 0)),         # batch-invariant low emb
        ],
        out_specs=pl.BlockSpec((1, H, D), lambda b: (b, 0, 0)),
        compiler_params=pltpu.CompilerParams(
            dimension_semantics=("parallel",)),
    )(comb_mask, cos, low_emb)


# ----------------------------------------------------------------------------
# Kernel 2: fused per-token lut gather (manual HBM DMA) + per-batch noise
# selection (one-hot MXU) + add + sqrt(d_model) scale.
# ----------------------------------------------------------------------------
def _fused_embed_kernel(x_sm, sel_ref, lut_hbm, noise_ref, o_ref,
                        gbuf, sem, *, scale, ts, seq_len):
    b = pl.program_id(0)
    t = pl.program_id(1)
    base = t * ts

    # Issue one row DMA per token: lut[x[b, pos]] -> gbuf[r].  Positions are
    # clamped so a ragged last tile never dereferences a garbage token id.
    def _issue(r, carry):
        pos = jnp.minimum(base + r, seq_len - 1)
        tok = x_sm[b, pos]
        pltpu.make_async_copy(lut_hbm.at[tok], gbuf.at[r], sem.at[0]).start()
        return carry
    lax.fori_loop(0, ts, _issue, 0)

    # Overlap: select this tile's noise rows while the token-row DMAs fly.
    noise_b = noise_ref[0]                                       # [H, D] f32
    H = noise_b.shape[0]
    idx = sel_ref[0]                                             # [ts, 1]; -1 => zero row
    cols = lax.broadcasted_iota(jnp.int32, (ts, H), 1)
    onehot = (cols == idx).astype(jnp.float32)                   # all-zero row when idx < 0
    gathered = jnp.dot(onehot, noise_b,
                       preferred_element_type=jnp.float32)       # [ts, D]

    # Wait for the ts row DMAs (each wait consumes one row's worth of bytes).
    def _wait(r, carry):
        pltpu.make_async_copy(lut_hbm.at[0], gbuf.at[r], sem.at[0]).wait()
        return carry
    lax.fori_loop(0, ts, _wait, 0)

    o_ref[0] = ((gbuf[...].astype(jnp.float32) + gathered) * scale).astype(o_ref.dtype)


def _choose_token_tile(S, D, H, itemsize, vmem_budget=20 << 20, max_rows=512):
    """Largest seq tile (multiple of 8, or the full S) under the VMEM budget."""
    fixed = 2 * H * D * 4                                   # double-buffered noise block
    per_row = 2 * D * itemsize + D * itemsize + 2 * 4       # out(x2) + gather buf + sel(x2)
    ts = max(8, min(max_rows, (vmem_budget - fixed) // per_row))
    if ts >= S:
        return S
    return (ts // 8) * 8


def fused_embed_add_scale(x_tok, sel, lut, noise, scale):
    bs, S = x_tok.shape
    vocab, D = lut.shape
    H = noise.shape[1]
    ts = _choose_token_tile(S, D, H, jnp.dtype(lut.dtype).itemsize)
    T = pl.cdiv(S, ts)
    sel3 = sel.reshape(bs, S, 1)
    kernel = functools.partial(_fused_embed_kernel, scale=scale, ts=ts, seq_len=S)
    return pl.pallas_call(
        kernel,
        out_shape=jax.ShapeDtypeStruct((bs, S, D), lut.dtype),
        grid_spec=pltpu.PrefetchScalarGridSpec(
            num_scalar_prefetch=1,                     # token ids -> SMEM
            grid=(bs, T),
            in_specs=[
                pl.BlockSpec((1, ts, 1), lambda b, t, x_sm: (b, t, 0)),  # in-batch h index
                pl.BlockSpec(memory_space=pl.ANY),                       # lut stays in HBM
                pl.BlockSpec((1, H, D), lambda b, t, x_sm: (b, 0, 0)),   # per-batch noise
            ],
            out_specs=pl.BlockSpec((1, ts, D), lambda b, t, x_sm: (b, t, 0)),
            scratch_shapes=[
                pltpu.VMEM((ts, D), lut.dtype),        # gathered token rows
                pltpu.SemaphoreType.DMA((1,)),
            ],
        ),
        compiler_params=pltpu.CompilerParams(
            dimension_semantics=("parallel", "parallel"),
            vmem_limit_bytes=48 << 20,   # > v5e 16 MiB scoped default, < v7x 64 MiB physical
        ),
    )(x_tok.astype(jnp.int32), sel3, lut, noise)


# ----------------------------------------------------------------------------
# Forward wrapper
# ----------------------------------------------------------------------------
def low_freq_noise_forward(lut, d_model, x, reverse_high_freqs=None,
                           common_low_freqs=None, common_high_freqs=None,
                           low_freqs_masks=None, high_freqs_masks=None):
    scale = float(math.sqrt(d_model))

    if reverse_high_freqs is None:
        # Perf review: let XLA fuse the scalar multiply into its gather rather
        # than paying an extra HBM round trip through a standalone Pallas pass.
        return lut[x] * jnp.asarray(scale, lut.dtype)

    # TODO(synk): the small data-dependent gathers (lut rows of the common
    # low/high-freq word lists, reverse_high_freqs per-token lookup) remain
    # plain-JAX glue; the large per-token lut[x] gather is fused into kernel 2.
    low_emb = lut[common_low_freqs].astype(jnp.float32)      # [L, D]
    high_emb = lut[common_high_freqs].astype(jnp.float32)    # [H, D]

    cos = compute_cosine(low_emb, high_emb)                  # [H, L], once per call

    comb_mask = (high_freqs_masks[:, :, None] |
                 low_freqs_masks[:, None, :]).astype(jnp.int32)      # [bs, H, L]
    noise = compute_noise_embeddings(comb_mask, cos, low_emb)        # [bs, H, D]

    sel = jnp.take_along_axis(reverse_high_freqs, x, axis=1).astype(jnp.int32)  # [bs, S]

    return fused_embed_add_scale(x, sel, lut, noise, scale)          # [bs, S, D]


# ----------------------------------------------------------------------------
# Pure-JAX reference (mirrors the torch code) used for the correctness check.
# ----------------------------------------------------------------------------
def reference_forward(lut, d_model, x, reverse_high_freqs, common_low_freqs,
                      common_high_freqs, low_freqs_masks, high_freqs_masks):
    low_emb = lut[common_low_freqs]
    high_emb = lut[common_high_freqs]
    dot = high_emb @ low_emb.T
    nl = jnp.linalg.norm(low_emb, axis=1, keepdims=True)
    nh = jnp.linalg.norm(high_emb, axis=1, keepdims=True)
    cos = dot / (nh @ nl.T)                                           # [H, L]
    bs = x.shape[0]
    H = high_emb.shape[0]
    m = jnp.where(high_freqs_masks[:, :, None], -jnp.inf, cos[None])  # [bs,H,L]
    m = jnp.swapaxes(m, 1, 2)                                         # [bs,L,H]
    m = jnp.where(low_freqs_masks[:, :, None], -jnp.inf, m)
    argm = jnp.argmax(m, axis=-1)                                     # [bs,L]
    keep = jax.nn.one_hot(argm, m.shape[-1], dtype=bool)
    m = jnp.where(keep, m, -jnp.inf)
    m = jnp.swapaxes(m, 1, 2)                                         # [bs,H,L]
    m = jnp.concatenate([m, jnp.full((bs, m.shape[1], 1), -10000.0)], axis=-1)
    w = jax.nn.softmax(m, axis=-1)[:, :, :-1]
    noise = w @ low_emb                                               # [bs,H,D]
    noise = jnp.concatenate([noise, jnp.zeros((bs, 1, d_model))], axis=1)
    rev_tok = jnp.take_along_axis(reverse_high_freqs, x, axis=1)
    sel = jnp.where(rev_tok < 0, H, rev_tok)
    noise_sel = jax.vmap(lambda nb, sb: nb[sb])(noise, sel)
    return (lut[x] + noise_sel) * math.sqrt(d_model)


if __name__ == "__main__":
    d_model = 128
    vocab = 64
    bs, seq = 2, 8
    L, H = 16, 8   # number of low-frequency / high-frequency words

    key = jax.random.PRNGKey(0)
    k_lut, k_perm, k_x, k_lm, k_hm = jax.random.split(key, 5)

    # nn.Embedding(vocab, d_model) default init: N(0, 1)
    lut = jax.random.normal(k_lut, (vocab, d_model), dtype=jnp.float32)

    perm = jax.random.permutation(k_perm, vocab)
    common_high_freqs = perm[:H].astype(jnp.int32)
    common_low_freqs = perm[H:H + L].astype(jnp.int32)

    x = jax.random.randint(k_x, (bs, seq), 0, vocab, dtype=jnp.int32)

    low_freqs_masks = jax.random.bernoulli(k_lm, 0.3, (bs, L))
    high_freqs_masks = jax.random.bernoulli(k_hm, 0.3, (bs, H))

    # reverse_high_freqs[s][i] = j if common_high_freqs[j] == i else -1
    reverse_high_freqs = jnp.full((bs, vocab), -1, dtype=jnp.int32)
    reverse_high_freqs = reverse_high_freqs.at[:, common_high_freqs].set(
        jnp.arange(H, dtype=jnp.int32))

    # Noise path
    out = low_freq_noise_forward(lut, d_model, x, reverse_high_freqs,
                                 common_low_freqs, common_high_freqs,
                                 low_freqs_masks, high_freqs_masks)
    out = jax.block_until_ready(out)

    ref = reference_forward(lut, d_model, x, reverse_high_freqs,
                            common_low_freqs, common_high_freqs,
                            low_freqs_masks, high_freqs_masks)
    ref = jax.block_until_ready(ref)

    assert out.shape == (bs, seq, d_model)
    assert jnp.allclose(out, ref, rtol=1e-3, atol=1e-3), "mismatch vs reference"

    # No-noise path (pure XLA gather*scale per perf feedback)
    out0 = jax.block_until_ready(low_freq_noise_forward(lut, d_model, x))
    ref0 = lut[x] * math.sqrt(d_model)
    assert jnp.allclose(out0, ref0, rtol=1e-5, atol=1e-5), "mismatch (no-noise path)"

    print("KERNEL_OK")
</pallas_src>

<mosaic_0001>
module attributes {stable_mosaic.version = 11 : i64} {
  func.func @_cos_kernel(%arg0: memref<16x128xf32, #tpu.memory_space<vmem>>, %arg1: memref<8x128xf32, #tpu.memory_space<vmem>>, %arg2: memref<8x16xf32, #tpu.memory_space<vmem>>) attributes {dimension_semantics = [], scalar_prefetch = 0 : i64, scratch_operands = 0 : i64, tpu.core_type = #tpu.core_type<tc>} {
    %c0 = arith.constant 0 : index
    %c0_0 = arith.constant 0 : index
    %0 = vector.load %arg0[%c0, %c0_0] : memref<16x128xf32, #tpu.memory_space<vmem>>, vector<16x128xf32>
    %c0_1 = arith.constant 0 : index
    %c0_2 = arith.constant 0 : index
    %1 = vector.load %arg1[%c0_1, %c0_2] : memref<8x128xf32, #tpu.memory_space<vmem>>, vector<8x128xf32>
    %2 = arith.mulf %0, %0 : vector<16x128xf32>
    %cst = arith.constant dense<0.000000e+00> : vector<16xf32>
    %3 = vector.multi_reduction <add>, %2, %cst [1] : vector<16x128xf32> to vector<16xf32>
    %4 = vector.shape_cast %3 : vector<16xf32> to vector<16x1xf32>
    %5 = math.rsqrt %4 : vector<16x1xf32>
    %6 = arith.mulf %1, %1 : vector<8x128xf32>
    %cst_3 = arith.constant dense<0.000000e+00> : vector<8xf32>
    %7 = vector.multi_reduction <add>, %6, %cst_3 [1] : vector<8x128xf32> to vector<8xf32>
    %8 = vector.shape_cast %7 : vector<8xf32> to vector<8x1xf32>
    %9 = math.rsqrt %8 : vector<8x1xf32>
    %10 = vector.broadcast %9 : vector<8x1xf32> to vector<8x128xf32>
    %11 = arith.mulf %1, %10 : vector<8x128xf32>
    %12 = vector.broadcast %5 : vector<16x1xf32> to vector<16x128xf32>
    %13 = arith.mulf %0, %12 : vector<16x128xf32>
    %cst_4 = arith.constant dense<0.000000e+00> : vector<8x16xf32>
    %14 = tpu.matmul %11, %13, %cst_4 {dimension_numbers = #tpu.dot_dimension_numbers<[1], [1], [0], [0], [0, 0, 1, 0], [], []>} : vector<8x128xf32>, vector<16x128xf32>, vector<8x16xf32> -> vector<8x16xf32>
    %c0_5 = arith.constant 0 : index
    %c0_6 = arith.constant 0 : index
    %15 = vector.load %arg2[%c0_5, %c0_6] : memref<8x16xf32, #tpu.memory_space<vmem>>, vector<8x16xf32>
    tpu.vector_store %arg2[%c0_5, %c0_6], %14 {strides = array<i32>} : memref<8x16xf32, #tpu.memory_space<vmem>>, vector<8x16xf32>,
    return
  }
}

</mosaic_0001>

<bundles_post_ra>
// kernel: tpu_custom_call.1
= control target key start
LH: loop header
LB: loop body
LE: loop exit
PB: predicated region body
PF: predicated region fallthrough
CT: control target
= control target key end

     0   :  { %7 = vsyncpa [#allocation3], 0  ;;  %s302_s0 = inlined_call_operand.hbm [shape: f32[16,128], index: 0, kind: input, shape index: {}]   ;;  %s303_s1 = inlined_call_operand.hbm [shape: f32[8,128], index: 1, kind: input, shape index: {}]   ;;  %s304_s2 = inlined_call_operand.hbm [shape: f32[8,16], index: 2, kind: output, shape index: {}]  }
   0x1   :  { %8 = vsyncpa [#allocation6], 0 }
   0x2   :  { %9 = vsyncpa [#allocation4], 0  ;;  %s243_s9 = smov [#allocation2]   ;;  %s171_s13 = scalar_lea.hbm %s302_s0, 256 }
   0x3   :  { %s15_s10 = sshll.u32 %s243_s9, 4  ;;  %p172_p0 = scmp.ne.s32.totalorder %s302_s0, %s171_s13  ;;  %s16_s10 = int_to_ptr.vmem [resolvable:$true] %s15_s10 }
   0x4   :  { %p175_p1 = scmp.lt.u32.totalorder %s171_s13, %s302_s0 }
   0x6   :  { %p177_p2 = pnand %p175_p1, %p172_p0 }
   0x8   :  { %180 = shalt.err (!%p177_p2)
}
   0x9   :  { %s181_s18 = scalar_lea.vmem %s16_s10, 256  ;;  %p186_p4 = scmp.lt.s32.totalorder %s16_s10, %s16_s10 }
   0xa   :  { %p182_p3 = scmp.ne.s32.totalorder %s16_s10, %s181_s18  ;;  %p187_p5 = scmp.lt.s32.totalorder %s181_s18, %s181_s18 }
   0xc   :  { %p188_p6 = por %p187_p5, %p186_p4 }
   0xe   :  { %p189_p7 = pnand %p188_p6, %p182_p3 }
  0x10   :  { %192 = shalt.err (!%p189_p7)
}
  0x11   :  { %s244_s19 = smov 128   ;;  %s245_s20 = smov 8  }
  0x12   :  { %21 = dma.hbm_to_vmem [thread:$0]  %s302_s0, 256, %s16_s10, [#allocation3], %s244_s19, %s244_s19, %s245_s20  }
  0x13   :  { %s246_s23 = smov [#allocation5]   ;;  %s193_s27 = scalar_lea.hbm %s303_s1, 128 }
  0x14   :  { %s28_s24 = sshll.u32 %s246_s23, 4  ;;  %p194_p8 = scmp.ne.s32.totalorder %s303_s1, %s193_s27  ;;  %s29_s24 = int_to_ptr.vmem [resolvable:$true] %s28_s24 }
  0x15   :  { %p197_p9 = scmp.lt.u32.totalorder %s193_s27, %s303_s1 }
  0x17   :  { %p199_p10 = pnand %p197_p9, %p194_p8 }
  0x19   :  { %202 = shalt.err (!%p199_p10)
}
  0x1a   :  { %s203_s4 = scalar_lea.vmem %s29_s24, 128  ;;  %p208_p12 = scmp.lt.s32.totalorder %s29_s24, %s29_s24 }
  0x1b   :  { %p204_p11 = scmp.ne.s32.totalorder %s29_s24, %s203_s4  ;;  %p209_p13 = scmp.lt.s32.totalorder %s203_s4, %s203_s4 }
  0x1d   :  { %p210_p0 = por %p209_p13, %p208_p12 }
  0x1f   :  { %p211_p1 = pnand %p210_p0, %p204_p11 }
  0x21   :  { %214 = shalt.err (!%p211_p1)
}
  0x22   :  { %31 = dma.hbm_to_vmem [thread:$0]  %s303_s1, 128, %s29_s24, [#allocation6]  }
  0x23   :  { %237 = dma.done.wait [#allocation3], 256  }
  0x24   :  { %238 = vsyncadd [#allocation3], 4294967040 }
  0x25   :  { %239 = dma.done.wait [#allocation6], 128  }
  0x26   :  { %240 = vsyncadd [#allocation6], 4294967168  ;;  %v38_v0 = vld [vmem:[#allocation2] sm:$0xff]  ;;  %v39_v1 = vld [vmem:[#allocation2 + $0x8] sm:$0xff]  ;;  %v247_v6 = vmov 0.0|0.0   ;;  %vm248_vm0 = vmmov 0  }
  0x27   :  { %v40_v2 = vld [vmem:[#allocation5] sm:$0xff]  ;;  %v41_v3 = vmul.f32 %v38_v0, %v38_v0  ;;  %v42_v5 = vmul.f32 %v39_v1, %v39_v1  ;;  %154 = vmatprep.subr.bf16.mxu0 %v247_v6  ;;  %v249_v7 = vmov 0.0   ;;  %s250_s1 = smov [#allocation7]   ;;  %vm126_vm1 = vcmask 130048  }
  0x28   :  { %v49_v4 = vmul.f32 %v40_v2, %v40_v2  ;;  %151 = vmatprep.mubr.msk.f32.mxu0 %vm248_vm0, %v249_v7  ;;  %s134_s6 = sshll.u32 %s250_s1, 4  ;;  %s135_s6 = int_to_ptr.vmem [resolvable:$true] %s134_s6 }
  0x29   :  { %43 = vadd.xlane.f32.xlu0 %v41_v3  ;;  %s215_s7 = scalar_lea.vmem %s135_s6, 128  ;;  %p220_p3 = scmp.lt.s32.totalorder %s135_s6, %s135_s6 }
  0x2a   :  { %50 = vadd.xlane.f32.xlu1 %v49_v4  ;;  %p216_p2 = scmp.ne.s32.totalorder %s135_s6, %s215_s7  ;;  %p221_p4 = scmp.lt.s32.totalorder %s215_s7, %s215_s7 }
  0x2c   :  { %p222_p5 = por %p221_p4, %p220_p3 }
  0x2d   :  { %45 = vadd.xlane.f32.xlu0 %v42_v5 }
  0x2e   :  { %p223_p6 = pnand %p222_p5, %p216_p2 }
  0xb6   :  { %v44_v8 = vpop.xlane.xlu0 %43 }
  0xb7   :  { %165 = vrsqrt.f32 %v44_v8  ;;  %v51_v10 = vpop.xlane.xlu1 %50 }
  0xba   :  { %v46_v9 = vpop.xlane.xlu0 %45 }
  0xbb   :  { %167 = vrsqrt.f32 %v46_v9 }
  0xbc   :  { %169 = vrsqrt.f32 %v51_v10 }
  0xc1   :  { %v166_v11 = vpop.eup %165 }
  0xc2   :  { %v54_v13 = vmul.f32 %v166_v11, %v38_v0 }
  0xc5   :  { %v168_v12 = vpop.eup %167 }
  0xc6   :  { %v55_v14 = vmul.f32 %v168_v12, %v39_v1  ;;  %v170_v16 = vpop.eup %169 }
  0xc7   :  { %v53_v17 = vmul.f32 %v170_v16, %v40_v2 }
  0xc8   :  { %v155_v15 = vpack.c.bf16 %v55_v14, %v54_v13 }
  0xca   :  { %156 = vmatpush3.bf16.xpose.msra.mxu0 %v155_v15 }
  0xd1   :  { %152 = vmatmul.mubr.f32.vlgmr.msra.gmra.mrb[0].mxu0 %v53_v17 }
 0x1a4   :  { %v122_v18 = vpop.f32.mrb[0].mxu0 }
 0x1a5   :  { %v153_v19 = vpop.f32.mrb[1].mxu0  ;;  %127 = vst.msk [vmem:[#allocation7] sm:$0xff] %vm126_vm1, %v122_v18 }
 0x1a6   :  { %226 = shalt.err (!%p223_p6)
}
 0x1a7   :  { %s227_s10 = scalar_lea.hbm %s304_s2, 128 }
 0x1a8   :  { %p228_p7 = scmp.ne.s32.totalorder %s304_s2, %s227_s10  ;;  %p231_p8 = scmp.lt.u32.totalorder %s227_s10, %s304_s2 }
 0x1aa   :  { %p233_p9 = pnand %p231_p8, %p228_p7 }
 0x1ac   :  { %236 = shalt.err (!%p233_p9)
}
 0x1ad   :  { %137 = dma.vmem_to_hbm [thread:$0]  %s135_s6, 128, %s304_s2, [#allocation4]  }
 0x1ae   :  { %241 = dma.done.wait [#allocation4], 128  }
 0x1af   :  { %242 = vsyncadd [#allocation4], 4294967168 }
 0x1b0   :  { %141 = vsyncpa [#allocation3], 1 }
 0x1b1   :  { %142 = vsyncpa [#allocation6], 1 }
 0x1b2   :  { %143 = vsyncpa [#allocation4], 1 }

</bundles_post_ra>
